<compile_context>
chip_gen: v6e
topology: v6e:2x2x1
jax: 0.10.0
libtpu: 0.0.40
codegen_flags: <defaults>
</compile_context>

<pallas_src>
import jax
import jax.numpy as jnp
from jax.experimental import pallas as pl
from jax.experimental.pallas import tpu as pltpu

BN_EPS = 1e-5


def basic_layer_kernel(x_ref, w_ref, gamma_ref, beta_ref, o_ref):
    k = pl.program_id(1)

    @pl.when(k == 0)
    def _():
        o_ref[...] = jnp.zeros_like(o_ref)

    # Slice the K chunk out of the resident full-width x block (bf16), matmul on
    # the MXU with f32 accumulation directly into the resident output block.
    tk = w_ref.shape[0]
    k_start = pl.multiple_of(k * tk, 128)
    x_blk = x_ref[:, pl.ds(k_start, tk)]                    # [B, TK] bf16
    o_ref[...] += jnp.dot(x_blk, w_ref[...], preferred_element_type=jnp.float32)

    @pl.when(k == pl.num_programs(1) - 1)
    def _():
        y = o_ref[...]                                      # [B, TN] f32
        inv_b = 1.0 / y.shape[0]                            # compile-time constant

        # Two-pass batch statistics (y is already resident): mean, then centered
        # second moment -> variance is guaranteed non-negative.
        mean = jnp.sum(y, axis=0, keepdims=True) * inv_b    # [1, TN]
        d = y - mean
        var = jnp.sum(d * d, axis=0, keepdims=True) * inv_b  # biased (training) var

        # Fold BN affine into a single per-column scale/shift, then ReLU.
        scale = gamma_ref[...] * jax.lax.rsqrt(var + BN_EPS)    # [1, TN]
        shift = beta_ref[...] - mean * scale                    # [1, TN]
        o_ref[...] = jnp.maximum(y * scale + shift, 0.0)


def _round_up(v, m):
    return ((v + m - 1) // m) * m


def _choose_tile(dim, max_tile, waste_cap=0.34):
    """Pick a large 128-multiple tile; pad `dim` up to a multiple of it.

    Prefers the biggest candidate whose padding overhead (vs the 128-aligned
    size) stays under `waste_cap`, so awkward sizes (640, 896, ...) still get
    big tiles instead of the 128 fallback.
    """
    aligned = _round_up(dim, 128)
    for t in (2048, 1024, 768, 512, 384, 256, 128):
        if t > max_tile:
            continue
        padded = _round_up(dim, t)
        if padded == aligned or padded <= aligned * (1.0 + waste_cap):
            return t, padded
    return 128, aligned


def _pad_cast_2d(a, pad_r, pad_c, dtype):
    # Skip the extra HBM pass when nothing needs to change.
    if a.dtype != dtype:
        a = a.astype(dtype)
    if pad_r or pad_c:
        a = jnp.pad(a, ((0, pad_r), (0, pad_c)))
    return a


def basic_layer(x, w, gamma, beta, *, max_tn=512, max_tk=1024):
    """x: [B, n_in], w: [n_in, n_out], gamma/beta: [1, n_out] -> [B, n_out] (f32)."""
    B, n_in = x.shape
    n_in_w, n_out = w.shape
    assert n_in_w == n_in
    assert gamma.shape == (1, n_out) and beta.shape == (1, n_out)

    # Lane-dense, tile-aligned feature dims. Batch B stays whole per block (no
    # sublane-8 requirement since the block spans the full array dim), which is
    # required for correct full-batch BN statistics.
    TK, n_in_p = _choose_tile(n_in, max_tk)
    TN, n_out_p = _choose_tile(n_out, max_tn)

    # Ensure >= 2 tiles on the parallel N axis when possible, so v7x's second
    # TensorCore gets work (neutral on single-core v5e/v6e).
    if n_out_p // TN == 1 and n_out_p > 128:
        m = n_out_p // 128
        for d in range(m // 2, 0, -1):
            if m % d == 0:
                TN = 128 * d
                break

    x_p = _pad_cast_2d(x, 0, n_in_p - n_in, jnp.bfloat16)
    w_p = _pad_cast_2d(w, n_in_p - n_in, n_out_p - n_out, jnp.bfloat16)
    # Padded output columns get gamma=beta=0 (and are sliced off at the end).
    g_p = _pad_cast_2d(gamma, 0, n_out_p - n_out, jnp.float32)
    b_p = _pad_cast_2d(beta, 0, n_out_p - n_out, jnp.float32)

    grid = (n_out_p // TN, n_in_p // TK)   # (parallel N tiles, arbitrary K tiles)

    # Derive the VMEM requirement (double-buffered tiles + headroom); cap at
    # 48 MiB so it stays well inside v7x's 64 MiB per-core VMEM.
    vmem_need = (
        2 * B * n_in_p * 2          # x (bf16, full-width block)
        + 2 * TK * TN * 2           # W tiles (bf16), double-buffered
        + 2 * B * TN * 4            # output tiles (f32), double-buffered
        + 2 * 2 * 2 * TN * 4        # gamma / beta tiles
    )
    vmem_limit = min(48 << 20, max(vmem_need + (8 << 20), 16 << 20))

    out_p = pl.pallas_call(
        basic_layer_kernel,
        out_shape=jax.ShapeDtypeStruct((B, n_out_p), jnp.float32),
        grid_spec=pltpu.PrefetchScalarGridSpec(
            num_scalar_prefetch=0,
            grid=grid,
            in_specs=[
                pl.BlockSpec((B, n_in_p), lambda j, k: (0, 0)),   # x (fetched once)
                pl.BlockSpec((TK, TN), lambda j, k: (k, j)),      # w
                pl.BlockSpec((1, TN), lambda j, k: (0, j)),       # gamma
                pl.BlockSpec((1, TN), lambda j, k: (0, j)),       # beta
            ],
            out_specs=pl.BlockSpec((B, TN), lambda j, k: (0, j)),
        ),
        compiler_params=pltpu.CompilerParams(
            dimension_semantics=("parallel", "arbitrary"),
            vmem_limit_bytes=vmem_limit,
        ),
    )(x_p, w_p, g_p, b_p)

    return out_p[:, :n_out]


def basic_layer_ref(x, w, gamma, beta):
    y = x @ w
    mean = jnp.mean(y, axis=0, keepdims=True)
    var = jnp.mean((y - mean) ** 2, axis=0, keepdims=True)
    y_hat = (y - mean) / jnp.sqrt(var + BN_EPS)
    return jnp.maximum(y_hat * gamma + beta, 0.0)


if __name__ == "__main__":
    B, n_in, n_out = 8, 16, 32

    key = jax.random.PRNGKey(0)
    kx, kw, kg, kb = jax.random.split(key, 4)

    x = jax.random.normal(kx, (B, n_in), dtype=jnp.float32)
    # PyTorch Linear stores weight as [n_out, n_in]; we keep it transposed [n_in, n_out].
    w = jax.random.normal(kw, (n_in, n_out), dtype=jnp.float32) * (1.0 / jnp.sqrt(n_in))
    # BatchNorm affine params (PyTorch init is gamma=1, beta=0; use non-trivial
    # deterministic values so the affine path is exercised).
    gamma = 1.0 + 0.1 * jax.random.normal(kg, (1, n_out), dtype=jnp.float32)
    beta = 0.05 * jax.random.normal(kb, (1, n_out), dtype=jnp.float32)

    out = basic_layer(x, w, gamma, beta)
    out = jax.block_until_ready(out)

    ref = basic_layer_ref(x, w, gamma, beta)
    assert out.shape == (B, n_out)
    # bf16 matmul inputs (f32 accumulation) -> loosened tolerance vs f32 reference.
    assert jnp.allclose(out, ref, atol=5e-2, rtol=5e-2), "mismatch vs reference"

    print("KERNEL_OK")
</pallas_src>

<mosaic_0001>
module attributes {stable_mosaic.version = 11 : i64} {
  func.func @basic_layer_kernel(%arg0: i32, %arg1: i32, %arg2: memref<8x128xbf16, #tpu.memory_space<vmem>>, %arg3: memref<128x128xbf16, #tpu.memory_space<vmem>>, %arg4: memref<1x128xf32, #tpu.memory_space<vmem>>, %arg5: memref<1x128xf32, #tpu.memory_space<vmem>>, %arg6: memref<8x128xf32, #tpu.memory_space<vmem>>) attributes {dimension_semantics = [#tpu.dimension_semantics<parallel>, #tpu.dimension_semantics<arbitrary>], iteration_bounds = array<i64: 1, 1>, scalar_prefetch = 0 : i64, scratch_operands = 0 : i64, tpu.core_type = #tpu.core_type<tc>, window_params = [{pipeline_mode = #tpu.pipeline_mode<synchronous>, transform_indices = @transform_0, window_bounds = array<i64: 8, 128>}, {transform_indices = @transform_1, window_bounds = array<i64: 128, 128>}, {transform_indices = @transform_2, window_bounds = array<i64: 1, 128>}, {transform_indices = @transform_3, window_bounds = array<i64: 1, 128>}, {transform_indices = @transform_4, window_bounds = array<i64: 8, 128>}]} {
    %c0_i32 = arith.constant 0 : i32
    %0 = arith.cmpi eq, %arg1, %c0_i32 : i32
    %1 = arith.extui %0 : i1 to i32
    %c0_i32_0 = arith.constant 0 : i32
    %2 = arith.cmpi ne, %1, %c0_i32_0 : i32
    scf.if %2 {
      %cst_9 = arith.constant 0.000000e+00 : f32
      %15 = vector.broadcast %cst_9 : f32 to vector<8x128xf32>
      %c0_10 = arith.constant 0 : index
      %c0_11 = arith.constant 0 : index
      %16 = vector.load %arg6[%c0_10, %c0_11] : memref<8x128xf32, #tpu.memory_space<vmem>>, vector<8x128xf32>
      tpu.vector_store %arg6[%c0_10, %c0_11], %15 {strides = array<i32>} : memref<8x128xf32, #tpu.memory_space<vmem>>, vector<8x128xf32>,
    } else {
    }
    %c128_i32 = arith.constant 128 : i32
    %3 = arith.muli %arg1, %c128_i32 : i32
    %4 = tpu.assume_multiple %3, 128 : i32
    %c0 = arith.constant 0 : index
    %5 = arith.index_cast %4 : i32 to index
    %6 = vector.load %arg2[%c0, %5] : memref<8x128xbf16, #tpu.memory_space<vmem>>, vector<8x128xbf16>
    %c0_1 = arith.constant 0 : index
    %c0_2 = arith.constant 0 : index
    %7 = vector.load %arg6[%c0_1, %c0_2] : memref<8x128xf32, #tpu.memory_space<vmem>>, vector<8x128xf32>
    %c0_3 = arith.constant 0 : index
    %c0_4 = arith.constant 0 : index
    %8 = vector.load %arg3[%c0_3, %c0_4] : memref<128x128xbf16, #tpu.memory_space<vmem>>, vector<128x128xbf16>
    %cst = arith.constant dense<0.000000e+00> : vector<8x128xf32>
    %9 = tpu.matmul %6, %8, %cst {dimension_numbers = #tpu.dot_dimension_numbers<[1], [0], [0], [1], [0, 0, 1, 1], [], []>} : vector<8x128xbf16>, vector<128x128xbf16>, vector<8x128xf32> -> vector<8x128xf32>
    %10 = arith.addf %7, %9 : vector<8x128xf32>
    %c0_5 = arith.constant 0 : index
    %c0_6 = arith.constant 0 : index
    %11 = vector.load %arg6[%c0_5, %c0_6] : memref<8x128xf32, #tpu.memory_space<vmem>>, vector<8x128xf32>
    tpu.vector_store %arg6[%c0_5, %c0_6], %10 {strides = array<i32>} : memref<8x128xf32, #tpu.memory_space<vmem>>, vector<8x128xf32>,
    %c0_i32_7 = arith.constant 0 : i32
    %12 = arith.cmpi eq, %arg1, %c0_i32_7 : i32
    %13 = arith.extui %12 : i1 to i32
    %c0_i32_8 = arith.constant 0 : i32
    %14 = arith.cmpi ne, %13, %c0_i32_8 : i32
    scf.if %14 {
      %c0_9 = arith.constant 0 : index
      %c0_10 = arith.constant 0 : index
      %15 = vector.load %arg6[%c0_9, %c0_10] : memref<8x128xf32, #tpu.memory_space<vmem>>, vector<8x128xf32>
      %cst_11 = arith.constant dense<0.000000e+00> : vector<128xf32>
      %16 = vector.multi_reduction <add>, %15, %cst_11 [0] : vector<8x128xf32> to vector<128xf32>
      %17 = vector.shape_cast %16 : vector<128xf32> to vector<1x128xf32>
      %cst_12 = arith.constant 1.250000e-01 : f32
      %18 = vector.broadcast %cst_12 : f32 to vector<1x128xf32>
      %19 = arith.mulf %17, %18 : vector<1x128xf32>
      %20 = vector.broadcast %19 : vector<1x128xf32> to vector<8x128xf32>
      %21 = arith.subf %15, %20 : vector<8x128xf32>
      %22 = arith.mulf %21, %21 : vector<8x128xf32>
      %cst_13 = arith.constant dense<0.000000e+00> : vector<128xf32>
      %23 = vector.multi_reduction <add>, %22, %cst_13 [0] : vector<8x128xf32> to vector<128xf32>
      %24 = vector.shape_cast %23 : vector<128xf32> to vector<1x128xf32>
      %cst_14 = arith.constant 1.250000e-01 : f32
      %25 = vector.broadcast %cst_14 : f32 to vector<1x128xf32>
      %26 = arith.mulf %24, %25 : vector<1x128xf32>
      %c0_15 = arith.constant 0 : index
      %c0_16 = arith.constant 0 : index
      %27 = vector.load %arg4[%c0_15, %c0_16] : memref<1x128xf32, #tpu.memory_space<vmem>>, vector<1x128xf32>
      %cst_17 = arith.constant 9.99999974E-6 : f32
      %28 = vector.broadcast %cst_17 : f32 to vector<1x128xf32>
      %29 = arith.addf %26, %28 : vector<1x128xf32>
      %30 = math.rsqrt %29 : vector<1x128xf32>
      %31 = arith.mulf %27, %30 : vector<1x128xf32>
      %c0_18 = arith.constant 0 : index
      %c0_19 = arith.constant 0 : index
      %32 = vector.load %arg5[%c0_18, %c0_19] : memref<1x128xf32, #tpu.memory_space<vmem>>, vector<1x128xf32>
      %33 = arith.mulf %19, %31 : vector<1x128xf32>
      %34 = arith.subf %32, %33 : vector<1x128xf32>
      %35 = vector.broadcast %31 : vector<1x128xf32> to vector<8x128xf32>
      %36 = arith.mulf %15, %35 : vector<8x128xf32>
      %37 = vector.broadcast %34 : vector<1x128xf32> to vector<8x128xf32>
      %38 = arith.addf %36, %37 : vector<8x128xf32>
      %cst_20 = arith.constant 0.000000e+00 : f32
      %39 = vector.broadcast %cst_20 : f32 to vector<8x128xf32>
      %40 = arith.maximumf %38, %39 : vector<8x128xf32>
      %c0_21 = arith.constant 0 : index
      %c0_22 = arith.constant 0 : index
      %41 = vector.load %arg6[%c0_21, %c0_22] : memref<8x128xf32, #tpu.memory_space<vmem>>, vector<8x128xf32>
      tpu.vector_store %arg6[%c0_21, %c0_22], %40 {strides = array<i32>} : memref<8x128xf32, #tpu.memory_space<vmem>>, vector<8x128xf32>,
    } else {
    }
    return
  }
  func.func @transform_0(%arg0: i32, %arg1: i32) -> (i32, i32) {
    %c0_i32 = arith.constant 0 : i32
    %c0_i32_0 = arith.constant 0 : i32
    %c0_i32_1 = arith.constant 0 : i32
    return %c0_i32, %c0_i32_0 : i32, i32
  }
  func.func @transform_1(%arg0: i32, %arg1: i32) -> (i32, i32) {
    %c0_i32 = arith.constant 0 : i32
    return %arg1, %arg0 : i32, i32
  }
  func.func @transform_2(%arg0: i32, %arg1: i32) -> (i32, i32) {
    %c0_i32 = arith.constant 0 : i32
    %c0_i32_0 = arith.constant 0 : i32
    return %c0_i32, %arg0 : i32, i32
  }
  func.func @transform_3(%arg0: i32, %arg1: i32) -> (i32, i32) {
    %c0_i32 = arith.constant 0 : i32
    %c0_i32_0 = arith.constant 0 : i32
    return %c0_i32, %arg0 : i32, i32
  }
  func.func @transform_4(%arg0: i32, %arg1: i32) -> (i32, i32) {
    %c0_i32 = arith.constant 0 : i32
    %c0_i32_0 = arith.constant 0 : i32
    return %c0_i32, %arg0 : i32, i32
  }
}

</mosaic_0001>

<bundles_post_ra>
// kernel: tpu_custom_call.1
= control target key start
LH: loop header
LB: loop body
LE: loop exit
PB: predicated region body
PF: predicated region fallthrough
CT: control target
= control target key end

     0   :  { %9 = vsyncpa [#allocation3], 0  ;;  %s391_s0 = inlined_call_operand.hbm [shape: bf16[8,128], index: 0, kind: input, shape index: {}]   ;;  %s392_s1 = inlined_call_operand.hbm [shape: bf16[128,128], index: 1, kind: input, shape index: {}]   ;;  %s393_s2 = inlined_call_operand.vmem [shape: f32[1,128], index: 2, kind: input, shape index: {}]   ;;  %s394_s3 = inlined_call_operand.vmem [shape: f32[1,128], index: 3, kind: input, shape index: {}]   ;;  %s395_s4 = inlined_call_operand.hbm [shape: f32[8,128], index: 4, kind: output, shape index: {}]  }
   0x1   :  { %10 = vsyncpa [#allocation6], 0 }
   0x2   :  { %11 = vsyncpa [#allocation4], 0  ;;  %s344_s15 = smov [#allocation2]   ;;  %s345_s17 = smov [#allocation5]  }
   0x3   :  { %s18_s16 = sshll.u32 %s344_s15, 4  ;;  %s27_s18 = sshll.u32 %s345_s17, 4  ;;  %s19_s16 = int_to_ptr.vmem [resolvable:$true] %s18_s16  ;;  %s28_s18 = int_to_ptr.vmem [resolvable:$true] %s27_s18 }
   0x4   :  { %s286_s19 = scalar_lea.vmem %s19_s16, 64  ;;  %p291_p1 = scmp.lt.s32.totalorder %s19_s16, %s19_s16 }
   0x5   :  { %p287_p0 = scmp.ne.s32.totalorder %s19_s16, %s286_s19  ;;  %p292_p2 = scmp.lt.s32.totalorder %s286_s19, %s286_s19 }
   0x7   :  { %p293_p3 = por %p292_p2, %p291_p1 }
   0x9   :  { %p294_p4 = pnand %p293_p3, %p287_p0 }
   0xb   :  { %297 = shalt.err (!%p294_p4)
}
   0xc   :  { %21 = dma.hbm_to_vmem [thread:$0]  %s391_s0, 64, %s19_s16, [#allocation3]  }
   0xd   :  { %s306_s22 = scalar_lea.vmem %s28_s18, 1024  ;;  %p311_p6 = scmp.lt.s32.totalorder %s28_s18, %s28_s18 }
   0xe   :  { %p307_p5 = scmp.ne.s32.totalorder %s28_s18, %s306_s22  ;;  %p312_p7 = scmp.lt.s32.totalorder %s306_s22, %s306_s22 }
  0x10   :  { %p313_p8 = por %p312_p7, %p311_p6 }
  0x12   :  { %p314_p9 = pnand %p313_p8, %p307_p5 }
  0x14   :  { %317 = shalt.err (!%p314_p9)
}
  0x15   :  { %s346_s23 = smov 64   ;;  %s347_s24 = smov 4  }
  0x16   :  { %33 = dma.hbm_to_vmem [thread:$0]  %s392_s1, 1024, %s28_s18, [#allocation6], %s346_s23, %s346_s23, %s347_s24  }
  0x17   :  { %338 = dma.done.wait [#allocation3], 64  }
  0x18   :  { %339 = vsyncadd [#allocation3], 4294967232 }
  0x19   :  { %340 = dma.done.wait [#allocation6], 1024  }
  0x1a   :  { %341 = vsyncadd [#allocation6], 4294966272  ;;  %v348_v0 = vmov 0.0   ;;  %vm349_vm0 = vmmov 0   ;;  %v268_v1 = vld [vmem:[#allocation5 + $0x38] sm:$0xff]   ;;  %v269_v2 = vld [vmem:[#allocation5 + $0x30] sm:$0xff]   ;;  %v191_v31 = vlaneseq }
  0x1b   :  { %241 = vmatprep.subr.bf16.mxu0 %v348_v0  ;;  %257 = vmatprep.mubr.msk.bf16.mxu0 %vm349_vm0, %v348_v0  ;;  %v270_v3 = vld [vmem:[#allocation5 + $0x28] sm:$0xff]   ;;  %v271_v4 = vld [vmem:[#allocation5 + $0x20] sm:$0xff]   ;;  %v272_v5 = vld [vmem:[#allocation5 + $0x18] sm:$0xff]   ;;  %s350_s29 = smov [#allocation7]  }
  0x1c   :  { %242 = vmatpush3.bf16.msra.mxu0 %v268_v1  ;;  %v273_v6 = vld [vmem:[#allocation5 + $0x10] sm:$0xff]   ;;  %v274_v7 = vld [vmem:[#allocation5 + $0x8] sm:$0xff]   ;;  %v275_v8 = vld [vmem:[#allocation5] sm:$0xff]   ;;  %v192_v32 = vshrl.u32 %v191_v31, 7  ;;  %s212_s30 = sshll.u32 %s350_s29, 4  ;;  %s213_s30 = int_to_ptr.vmem [resolvable:$true] %s212_s30 }
  0x1d   :  { %243 = vmatprep.subr.bf16.mxu0 %v348_v0  ;;  %v55_v9 = vld [vmem:[#allocation2] sm:$0xf]  ;;  %s318_s5 = scalar_lea.vmem %s213_s30, 128  ;;  %p323_p11 = scmp.lt.s32.totalorder %s213_s30, %s213_s30 }
  0x1e   :  { %v183_v33 = vld [vmem:[%s393_s2] sm:$0x1]  ;;  %v193_v34 = vsub.s32 0, %v192_v32  ;;  %p319_p10 = scmp.ne.s32.totalorder %s213_s30, %s318_s5  ;;  %p324_p12 = scmp.lt.s32.totalorder %s318_s5, %s318_s5 }
  0x1f   :  { %v187_v37 = vld [vmem:[%s394_s3] sm:$0x1] }
  0x20   :  { %244 = vmatpush3.bf16.msra.mxu0 %v269_v2  ;;  %p325_p13 = por %p324_p12, %p323_p11 }
  0x21   :  { %245 = vmatprep.subr.bf16.mxu0 %v348_v0 }
  0x22   :  { %p326_p0 = pnand %p325_p13, %p319_p10 }
  0x24   :  { %246 = vmatpush3.bf16.msra.mxu0 %v270_v3 }
  0x25   :  { %247 = vmatprep.subr.bf16.mxu0 %v348_v0 }
  0x28   :  { %248 = vmatpush3.bf16.msra.mxu0 %v271_v4 }
  0x29   :  { %249 = vmatprep.subr.bf16.mxu0 %v348_v0 }
  0x2c   :  { %250 = vmatpush3.bf16.msra.mxu0 %v272_v5 }
  0x2d   :  { %251 = vmatprep.subr.bf16.mxu0 %v348_v0 }
  0x30   :  { %252 = vmatpush3.bf16.msra.mxu0 %v273_v6 }
  0x31   :  { %253 = vmatprep.subr.bf16.mxu0 %v348_v0 }
  0x34   :  { %254 = vmatpush3.bf16.msra.mxu0 %v274_v7 }
  0x35   :  { %255 = vmatprep.subr.bf16.mxu0 %v348_v0 }
  0x38   :  { %256 = vmatpush3.bf16.msra.mxu0 %v275_v8 }
  0x3b   :  { %258 = vmatmul.mubr.bf16.vlgmr.msra.gmra.mxu0 %v55_v9 }
  0xfb   :  { %v155_v10 = vpop.f32.mrf.mxu0 }
  0xfc   :  { %v167_v12 = vrot.slane %v155_v10, 4 }
  0xfd   :  { %v259_v11 = vpop.f32.mrf.mxu0 }
  0xfe   :  { %v168_v14 = vadd.f32 %v167_v12, %v155_v10 }
  0xff   :  { %v158_v13 = vpop.f32.mrf.mxu0 }
 0x100   :  { %v169_v16 = vrot.slane %v168_v14, 2 }
 0x101   :  { %v260_v15 = vpop.f32.mrf.mxu0 }
 0x102   :  { %v170_v17 = vadd.f32 %v169_v16, %v168_v14 }
 0x104   :  { %v171_v18 = vrot.slane %v170_v17, 1 }
 0x106   :  { %v172_v19 = vadd.f32 %v171_v18, %v170_v17 }
 0x108   :  { %v173_v20 = vmul.f32 0.125, %v172_v19 }
 0x10a   :  { %v174_v21 = vsub.f32 %v155_v10, %v173_v20 }
 0x10c   :  { %v175_v22 = vmul.f32 %v174_v21, %v174_v21 }
 0x10e   :  { %v176_v23 = vrot.slane %v175_v22, 4 }
 0x110   :  { %v177_v24 = vadd.f32 %v176_v23, %v175_v22 }
 0x112   :  { %v178_v25 = vrot.slane %v177_v24, 2 }
 0x114   :  { %v179_v26 = vadd.f32 %v178_v25, %v177_v24 }
 0x116   :  { %v180_v27 = vrot.slane %v179_v26, 1 }
 0x118   :  { %v181_v28 = vadd.f32 %v180_v27, %v179_v26 }
 0x11a   :  { %v182_v29 = vmul.f32 0.125, %v181_v28 }
 0x11c   :  { %v184_v30 = vadd.f32 1e-05, %v182_v29 }
 0x11e   :  { %276 = vrsqrt.f32 %v184_v30 }
 0x12b   :  { %v277_v35 = vpop.eup %276 }
 0x12c   :  { %v186_v36 = vmul.f32 %v277_v35, %v183_v33 }
 0x12e   :  { %v188_v38 = vmul.f32 %v186_v36, %v173_v20  ;;  %v194_v39 = vrot.slane %v186_v36, %v193_v34 }
 0x130   :  { %v189_v40 = vsub.f32 %v187_v37, %v188_v38  ;;  %v196_v41 = vmul.f32 %v194_v39, %v155_v10 }
 0x132   :  { %v201_v42 = vrot.slane %v189_v40, %v193_v34 }
 0x134   :  { %v203_v43 = vadd.f32 %v201_v42, %v196_v41 }
 0x136   :  { %v204_v44 = vmax.f32 %v203_v43, 0.0 }
 0x138   :  { %205 = vst [vmem:[#allocation7] sm:$0xff] %v204_v44 }
 0x139   :  { %329 = shalt.err (!%p326_p0)
}
 0x13a   :  { %215 = dma.vmem_to_hbm [thread:$0]  %s213_s30, 128, %s395_s4, [#allocation4]  }
 0x13b   :  { %342 = dma.done.wait [#allocation4], 128  }
 0x13c   :  { %343 = vsyncadd [#allocation4], 4294967168 }
 0x13d   :  { %219 = vsyncpa [#allocation3], 1 }
 0x13e   :  { %220 = vsyncpa [#allocation6], 1 }
 0x13f   :  { %221 = vsyncpa [#allocation4], 1 }

</bundles_post_ra>
